<compile_context>
chip_gen: v6e
topology: v6e:2x2x1
jax: 0.10.0
libtpu: 0.0.40
codegen_flags: <defaults>
</compile_context>

<pallas_src>
import functools

import jax
import jax.numpy as jnp
import numpy as np
from jax import lax
from jax.experimental import pallas as pl
from jax.experimental.pallas import tpu as pltpu

EPS = 1e-5          # PyTorch InstanceNorm2d default eps
LEAKY_SLOPE = 0.2   # nn.LeakyReLU(0.2)


# ------------------------------- fused kernel --------------------------------
def _fused_block_kernel(x_ref, w1_ref, s1_ref, t1_ref,
                        w2_ref, s2_ref, t2_ref,
                        o_ref, xp1_ref, xp2_ref,
                        *, H, W, Cout, K, instance_norm):
    """Two ConvLayers for one batch element, fully in VMEM.

    x_ref:  (1, H, W*Cin)          lane-dense input
    w1_ref: (K, W*Cin,  W*Cout)    banded layer-a weights (kw taps + width reflect folded)
    w2_ref: (K, W*Cout, W*Cout)    banded layer-b weights
    s*_ref: (1, W*Cout)            per-lane scale  (gamma tiled over w)
    t*_ref: (1, W*Cout)            per-lane shift  (beta tiled over w; conv bias if no IN)
    o_ref:  (1, H, W*Cout)         lane-dense output
    xp1/xp2: (H+2p, W*Cin/Cout)    height-reflection-padded scratch
    """
    p = K // 2
    WC = W * Cout
    inv_hw = 1.0 / (H * W)

    # Channel selector for per-channel reductions in lane-dense layout:
    # sel[c, m] == 1  iff  lane m holds channel c  (m % Cout == c).  One vreg.
    lane_ch = lax.broadcasted_iota(jnp.int32, (Cout, WC), 1) % Cout
    ch_ids = lax.broadcasted_iota(jnp.int32, (Cout, WC), 0)
    sel = (lane_ch == ch_ids).astype(jnp.float32)

    def fill_height_padded(xp_ref, x2d):
        # Interior rows, then reflection halo rows (full-row copies; the width
        # reflection is already folded into the banded weights).
        xp_ref[p:p + H, :] = x2d
        for dh in range(1, p + 1):
            xp_ref[p - dh:p - dh + 1, :] = xp_ref[p + dh:p + dh + 1, :]
            xp_ref[p + H - 1 + dh:p + H + dh, :] = xp_ref[p + H - 1 - dh:p + H - dh, :]

    def conv_norm_act(xp_ref, w_ref, scale, shift):
        # Banded conv: K matmuls, accumulate in f32.
        acc = jnp.dot(xp_ref[0:H, :], w_ref[0], preferred_element_type=jnp.float32)
        for kh in range(1, K):
            acc = acc + jnp.dot(xp_ref[kh:kh + H, :], w_ref[kh],
                                preferred_element_type=jnp.float32)
        if instance_norm:
            # Conv bias is exactly cancelled by mean subtraction -> skipped.
            # Single-pass stats: per-lane sum / sum-of-squares over rows (VPU),
            # then one cross-lane reduce (XLU) to per-channel values.
            rsum = jnp.sum(acc, axis=0, keepdims=True)                       # (1, WC)
            rsq = jnp.sum(acc * acc, axis=0, keepdims=True)                  # (1, WC)
            ch_mean = jnp.sum(sel * rsum, axis=1, keepdims=True) * inv_hw    # (Cout, 1)
            ch_msq = jnp.sum(sel * rsq, axis=1, keepdims=True) * inv_hw      # (Cout, 1)
            ch_var = ch_msq - ch_mean * ch_mean
            ch_inv = lax.rsqrt(ch_var + EPS)                                 # EUP
            # Broadcast back to lanes and fold gamma/beta/mean/inv into one FMA.
            mean_lane = jnp.sum(sel * ch_mean, axis=0, keepdims=True)        # (1, WC)
            inv_lane = jnp.sum(sel * ch_inv, axis=0, keepdims=True)          # (1, WC)
            a = inv_lane * scale                                             # (1, WC)
            b = shift - mean_lane * a                                        # (1, WC)
            y = acc * a + b                                                  # one pass
        else:
            y = acc + shift            # shift carries the conv bias in this mode
        return jnp.maximum(y, LEAKY_SLOPE * y)   # LeakyReLU(0.2), single VPU op

    # ---- layer a ----
    fill_height_padded(xp1_ref, x_ref[0])
    y1 = conv_norm_act(xp1_ref, w1_ref, s1_ref[...], t1_ref[...])
    # ---- layer b (intermediate activation never leaves VMEM) ----
    fill_height_padded(xp2_ref, y1)
    y2 = conv_norm_act(xp2_ref, w2_ref, s2_ref[...], t2_ref[...])
    o_ref[...] = y2.reshape(1, H, WC).astype(o_ref.dtype)


# --------------------------------- wrapper ------------------------------------
def _make_banded_weights(w, W_out):
    """Fold the kw taps and the *width* reflection into a banded weight matrix.

    w: (KH, KW, Cin, Cout)  ->  B: (KH, W_out*Cin, W_out*Cout)  such that
      out[h, w*Cout + co] = sum_kh sum_j xrow[h + kh, j] * B[kh, j, w*Cout + co]
    where xrow is the input reflection-padded in *height only* and flattened
    lane-dense as (Hp, W_out*Cin).
    """
    KH, KW, Cin, Cout = w.shape
    p = KW // 2
    wcols = jnp.arange(W_out)
    src_ids = jnp.arange(W_out)
    B = jnp.zeros((KH, W_out * Cin, W_out * Cout), jnp.float32)
    for kw in range(KW):                       # tiny static loop (trace time)
        t = wcols + kw - p                     # padded-frame source column
        u = jnp.abs(t)                         # reflect left edge
        u = jnp.where(u > W_out - 1, 2 * (W_out - 1) - u, u)   # reflect right edge
        S = (src_ids[:, None] == u[None, :]).astype(jnp.float32)        # (W_src, W_dst)
        contrib = jnp.einsum("uw,kio->kuiwo", S, w[:, kw].astype(jnp.float32))
        B = B + contrib.reshape(KH, W_out * Cin, W_out * Cout)
    return B


def conv_multi_block(x_nchw, params, *, kernel_size, instance_norm):
    """ConvMultiBlock.forward. x_nchw: (N, Cin, H, W) like PyTorch; returns NCHW."""
    N, Cin, H, W = x_nchw.shape
    K = kernel_size
    assert K % 2 == 1, "odd kernel sizes only (ReflectionPad2d(K//2) + valid conv)"
    p = K // 2
    assert p < H and p < W, "reflection pad must be smaller than the spatial dims"
    Cout = params["wa"].shape[-1]
    Hp = H + 2 * p
    WC = W * Cout

    # NCHW -> lane-dense (N, H, W*Cin): channels fastest, so one output pixel's
    # channels are contiguous lanes.
    x = jnp.transpose(x_nchw, (0, 2, 3, 1)).reshape(N, H, W * Cin)

    # Banded weights (built once, in XLA, from the HWIO conv weights).
    w1 = _make_banded_weights(params["wa"], W)   # (K, W*Cin,  W*Cout)
    w2 = _make_banded_weights(params["wb"], W)   # (K, W*Cout, W*Cout)

    def lane_vec(v):   # per-channel (Cout,) -> per-lane (1, W*Cout)
        return jnp.tile(v.astype(jnp.float32), W).reshape(1, WC)

    if instance_norm:
        s1, t1 = lane_vec(params["ga"]), lane_vec(params["bta"])
        s2, t2 = lane_vec(params["gb"]), lane_vec(params["btb"])
    else:
        ones = jnp.ones((Cout,), jnp.float32)
        s1, t1 = lane_vec(ones), lane_vec(params["ba"])
        s2, t2 = lane_vec(ones), lane_vec(params["bb"])

    kernel = functools.partial(
        _fused_block_kernel, H=H, W=W, Cout=Cout, K=K, instance_norm=instance_norm)

    flops = 2 * N * K * H * (W * Cin + W * Cout) * WC
    bytes_accessed = 4 * (x.size + w1.size + w2.size + N * H * WC)

    out = pl.pallas_call(
        kernel,
        out_shape=jax.ShapeDtypeStruct((N, H, WC), jnp.float32),
        grid=(N,),
        in_specs=[
            pl.BlockSpec((1, H, W * Cin), lambda n: (n, 0, 0)),
            pl.BlockSpec((K, W * Cin, WC), lambda n: (0, 0, 0)),   # weights stay resident
            pl.BlockSpec((1, WC), lambda n: (0, 0)),
            pl.BlockSpec((1, WC), lambda n: (0, 0)),
            pl.BlockSpec((K, WC, WC), lambda n: (0, 0, 0)),
            pl.BlockSpec((1, WC), lambda n: (0, 0)),
            pl.BlockSpec((1, WC), lambda n: (0, 0)),
        ],
        out_specs=pl.BlockSpec((1, H, WC), lambda n: (n, 0, 0)),
        scratch_shapes=[
            pltpu.VMEM((Hp, W * Cin), jnp.float32),   # height-padded layer-a input
            pltpu.VMEM((Hp, WC), jnp.float32),        # height-padded layer-b input
        ],
        compiler_params=pltpu.CompilerParams(
            dimension_semantics=("parallel",)),       # both v7x TCs get samples
        cost_estimate=pl.CostEstimate(
            flops=flops, transcendentals=4 * N * Cout, bytes_accessed=bytes_accessed),
    )(x, w1, s1, t1, w2, s2, t2)

    # lane-dense (N, H, W*Cout) -> NCHW
    return jnp.transpose(out.reshape(N, H, W, Cout), (0, 3, 1, 2))


# ----------------------------- pure-JAX reference -----------------------------
def _ref_conv_layer(x_nhwc, w, b, gamma, beta, *, kernel_size, instance_norm):
    p = kernel_size // 2
    xp = jnp.pad(x_nhwc, ((0, 0), (p, p), (p, p), (0, 0)), mode="reflect")
    out = lax.conv_general_dilated(
        xp, w, window_strides=(1, 1), padding="VALID",
        dimension_numbers=("NHWC", "HWIO", "NHWC"))
    out = out + b[None, None, None, :]
    if instance_norm:
        mean = jnp.mean(out, axis=(1, 2), keepdims=True)
        var = jnp.mean((out - mean) ** 2, axis=(1, 2), keepdims=True)
        out = (out - mean) * lax.rsqrt(var + EPS)
        out = out * gamma[None, None, None, :] + beta[None, None, None, :]
    return jnp.where(out > 0, out, LEAKY_SLOPE * out)


def _ref_conv_multi_block(x_nchw, params, *, kernel_size, instance_norm):
    x = jnp.transpose(x_nchw, (0, 2, 3, 1))
    out = _ref_conv_layer(x, params["wa"], params["ba"], params["ga"], params["bta"],
                          kernel_size=kernel_size, instance_norm=instance_norm)
    out = _ref_conv_layer(out, params["wb"], params["bb"], params["gb"], params["btb"],
                          kernel_size=kernel_size, instance_norm=instance_norm)
    return jnp.transpose(out, (0, 3, 1, 2))


# ------------------------------------ main ------------------------------------
if __name__ == "__main__":
    # ConvMultiBlock(in_channels=4, out_channels=8, kernel_size=3, instance_norm=True)
    N, Cin, H, W = 2, 4, 16, 16
    Cout, K = 8, 3
    instance_norm = True

    key = jax.random.PRNGKey(0)
    k = jax.random.split(key, 7)

    fan_a = Cin * K * K
    fan_b = Cout * K * K
    params = {
        "wa": jax.random.normal(k[0], (K, K, Cin, Cout), jnp.float32) / np.sqrt(fan_a),
        "ba": jax.random.normal(k[1], (Cout,), jnp.float32) * 0.1,
        "ga": 1.0 + 0.1 * jax.random.normal(k[2], (Cout,), jnp.float32),
        "bta": 0.1 * jax.random.normal(k[3], (Cout,), jnp.float32),
        "wb": jax.random.normal(k[4], (K, K, Cout, Cout), jnp.float32) / np.sqrt(fan_b),
        "bb": jax.random.normal(k[5], (Cout,), jnp.float32) * 0.1,
        "gb": jnp.ones((Cout,), jnp.float32),
        "btb": jnp.zeros((Cout,), jnp.float32),
    }

    x = jax.random.normal(k[6], (N, Cin, H, W), jnp.float32)   # PyTorch-style NCHW

    out = conv_multi_block(x, params, kernel_size=K, instance_norm=instance_norm)
    out = jax.block_until_ready(out)

    ref = _ref_conv_multi_block(x, params, kernel_size=K, instance_norm=instance_norm)
    ref = jax.block_until_ready(ref)

    assert out.shape == (N, Cout, H, W), out.shape
    np.testing.assert_allclose(np.asarray(out), np.asarray(ref), rtol=1e-4, atol=1e-4)

    print("KERNEL_OK")
</pallas_src>

<mosaic_0001>
module attributes {stable_mosaic.version = 11 : i64} {
  func.func @_fused_block_kernel(%arg0: i32, %arg1: memref<1x16x64xf32, #tpu.memory_space<vmem>>, %arg2: memref<3x64x128xf32, #tpu.memory_space<vmem>>, %arg3: memref<1x128xf32, #tpu.memory_space<vmem>>, %arg4: memref<1x128xf32, #tpu.memory_space<vmem>>, %arg5: memref<3x128x128xf32, #tpu.memory_space<vmem>>, %arg6: memref<1x128xf32, #tpu.memory_space<vmem>>, %arg7: memref<1x128xf32, #tpu.memory_space<vmem>>, %arg8: memref<1x16x128xf32, #tpu.memory_space<vmem>>, %arg9: memref<18x64xf32, #tpu.memory_space<vmem>>, %arg10: memref<18x128xf32, #tpu.memory_space<vmem>>) attributes {dimension_semantics = [#tpu.dimension_semantics<parallel>], iteration_bounds = array<i64: 2>, scalar_prefetch = 0 : i64, scratch_operands = 2 : i64, tpu.core_type = #tpu.core_type<tc>, window_params = [{transform_indices = @transform_0, window_bounds = array<i64: 1, 16, 64>}, {pipeline_mode = #tpu.pipeline_mode<synchronous>, transform_indices = @transform_1, window_bounds = array<i64: 3, 64, 128>}, {pipeline_mode = #tpu.pipeline_mode<synchronous>, transform_indices = @transform_2, window_bounds = array<i64: 1, 128>}, {pipeline_mode = #tpu.pipeline_mode<synchronous>, transform_indices = @transform_3, window_bounds = array<i64: 1, 128>}, {pipeline_mode = #tpu.pipeline_mode<synchronous>, transform_indices = @transform_4, window_bounds = array<i64: 3, 128, 128>}, {pipeline_mode = #tpu.pipeline_mode<synchronous>, transform_indices = @transform_5, window_bounds = array<i64: 1, 128>}, {pipeline_mode = #tpu.pipeline_mode<synchronous>, transform_indices = @transform_6, window_bounds = array<i64: 1, 128>}, {transform_indices = @transform_7, window_bounds = array<i64: 1, 16, 128>}]} {
    %0 = tpu.iota {dimensions = array<i32: 1>} : vector<8x128xi32>
    %c8_i32 = arith.constant 8 : i32
    %c0_i32 = arith.constant 0 : i32
    %1 = arith.cmpi eq, %c8_i32, %c0_i32 : i32
    %c1_i32 = arith.constant 1 : i32
    %2 = arith.select %1, %c1_i32, %c8_i32 : i32
    %3 = vector.broadcast %2 : i32 to vector<8x128xi32>
    %4 = arith.remsi %0, %3 : vector<8x128xi32>
    %c0_i32_0 = arith.constant 0 : i32
    %5 = vector.broadcast %c0_i32_0 : i32 to vector<8x128xi32>
    %6 = arith.cmpi ne, %4, %5 : vector<8x128xi32>
    %c0_i32_1 = arith.constant 0 : i32
    %7 = vector.broadcast %c0_i32_1 : i32 to vector<8x128xi32>
    %8 = arith.cmpi slt, %4, %7 : vector<8x128xi32>
    %c0_i32_2 = arith.constant 0 : i32
    %9 = arith.cmpi slt, %2, %c0_i32_2 : i32
    %10 = vector.broadcast %9 : i1 to vector<8x128xi1>
    %11 = vector.broadcast %10 : vector<8x128xi1> to vector<8x128xi1>
    %12 = arith.xori %8, %11 : vector<8x128xi1>
    %13 = arith.andi %12, %6 : vector<8x128xi1>
    %14 = vector.broadcast %2 : i32 to vector<8x128xi32>
    %15 = arith.addi %4, %14 : vector<8x128xi32>
    %16 = arith.select %13, %15, %4 : vector<8x128xi1>, vector<8x128xi32>
    %17 = tpu.iota {dimensions = array<i32: 0>} : vector<8x128xi32>
    %18 = arith.cmpi eq, %16, %17 : vector<8x128xi32>
    %19 = arith.extui %18 : vector<8x128xi1> to vector<8x128xi32>
    %20 = arith.sitofp %19 : vector<8x128xi32> to vector<8x128xf32>
    %c0 = arith.constant 0 : index
    %c0_3 = arith.constant 0 : index
    %c0_4 = arith.constant 0 : index
    %21 = vector.load %arg1[%c0, %c0_3, %c0_4] : memref<1x16x64xf32, #tpu.memory_space<vmem>>, vector<1x16x64xf32>
    %22 = vector.shape_cast %21 : vector<1x16x64xf32> to vector<16x64xf32>
    %c1 = arith.constant 1 : index
    %c0_5 = arith.constant 0 : index
    %23 = vector.load %arg9[%c1, %c0_5] : memref<18x64xf32, #tpu.memory_space<vmem>>, vector<16x64xf32>
    tpu.vector_store %arg9[%c1, %c0_5], %22 {strides = array<i32>} : memref<18x64xf32, #tpu.memory_space<vmem>>, vector<16x64xf32>,
    %c2 = arith.constant 2 : index
    %c0_6 = arith.constant 0 : index
    %24 = vector.load %arg9[%c2, %c0_6] : memref<18x64xf32, #tpu.memory_space<vmem>>, vector<1x64xf32>
    %c0_7 = arith.constant 0 : index
    %c0_8 = arith.constant 0 : index
    %25 = vector.load %arg9[%c0_7, %c0_8] : memref<18x64xf32, #tpu.memory_space<vmem>>, vector<1x64xf32>
    tpu.vector_store %arg9[%c0_7, %c0_8], %24 {strides = array<i32>} : memref<18x64xf32, #tpu.memory_space<vmem>>, vector<1x64xf32>,
    %c15 = arith.constant 15 : index
    %c0_9 = arith.constant 0 : index
    %26 = vector.load %arg9[%c15, %c0_9] : memref<18x64xf32, #tpu.memory_space<vmem>>, vector<1x64xf32>
    %c17 = arith.constant 17 : index
    %c0_10 = arith.constant 0 : index
    %27 = vector.load %arg9[%c17, %c0_10] : memref<18x64xf32, #tpu.memory_space<vmem>>, vector<1x64xf32>
    tpu.vector_store %arg9[%c17, %c0_10], %26 {strides = array<i32>} : memref<18x64xf32, #tpu.memory_space<vmem>>, vector<1x64xf32>,
    %c0_11 = arith.constant 0 : index
    %c0_12 = arith.constant 0 : index
    %28 = vector.load %arg3[%c0_11, %c0_12] : memref<1x128xf32, #tpu.memory_space<vmem>>, vector<1x128xf32>
    %c0_13 = arith.constant 0 : index
    %c0_14 = arith.constant 0 : index
    %29 = vector.load %arg4[%c0_13, %c0_14] : memref<1x128xf32, #tpu.memory_space<vmem>>, vector<1x128xf32>
    %c0_15 = arith.constant 0 : index
    %c0_16 = arith.constant 0 : index
    %30 = vector.load %arg9[%c0_15, %c0_16] : memref<18x64xf32, #tpu.memory_space<vmem>>, vector<16x64xf32>
    %c0_17 = arith.constant 0 : index
    %c0_18 = arith.constant 0 : index
    %c0_19 = arith.constant 0 : index
    %31 = vector.load %arg2[%c0_17, %c0_18, %c0_19] : memref<3x64x128xf32, #tpu.memory_space<vmem>>, vector<1x64x128xf32>
    %32 = vector.shape_cast %31 : vector<1x64x128xf32> to vector<64x128xf32>
    %cst = arith.constant dense<0.000000e+00> : vector<16x128xf32>
    %33 = tpu.matmul %30, %32, %cst {dimension_numbers = #tpu.dot_dimension_numbers<[1], [0], [0], [1], [0, 0, 1, 1], [], []>} : vector<16x64xf32>, vector<64x128xf32>, vector<16x128xf32> -> vector<16x128xf32>
    %c1_20 = arith.constant 1 : index
    %c0_21 = arith.constant 0 : index
    %34 = vector.load %arg9[%c1_20, %c0_21] : memref<18x64xf32, #tpu.memory_space<vmem>>, vector<16x64xf32>
    %c1_22 = arith.constant 1 : index
    %c0_23 = arith.constant 0 : index
    %c0_24 = arith.constant 0 : index
    %35 = vector.load %arg2[%c1_22, %c0_23, %c0_24] : memref<3x64x128xf32, #tpu.memory_space<vmem>>, vector<1x64x128xf32>
    %36 = vector.shape_cast %35 : vector<1x64x128xf32> to vector<64x128xf32>
    %cst_25 = arith.constant dense<0.000000e+00> : vector<16x128xf32>
    %37 = tpu.matmul %34, %36, %cst_25 {dimension_numbers = #tpu.dot_dimension_numbers<[1], [0], [0], [1], [0, 0, 1, 1], [], []>} : vector<16x64xf32>, vector<64x128xf32>, vector<16x128xf32> -> vector<16x128xf32>
    %38 = arith.addf %33, %37 : vector<16x128xf32>
    %c2_26 = arith.constant 2 : index
    %c0_27 = arith.constant 0 : index
    %39 = vector.load %arg9[%c2_26, %c0_27] : memref<18x64xf32, #tpu.memory_space<vmem>>, vector<16x64xf32>
    %c2_28 = arith.constant 2 : index
    %c0_29 = arith.constant 0 : index
    %c0_30 = arith.constant 0 : index
    %40 = vector.load %arg2[%c2_28, %c0_29, %c0_30] : memref<3x64x128xf32, #tpu.memory_space<vmem>>, vector<1x64x128xf32>
    %41 = vector.shape_cast %40 : vector<1x64x128xf32> to vector<64x128xf32>
    %cst_31 = arith.constant dense<0.000000e+00> : vector<16x128xf32>
    %42 = tpu.matmul %39, %41, %cst_31 {dimension_numbers = #tpu.dot_dimension_numbers<[1], [0], [0], [1], [0, 0, 1, 1], [], []>} : vector<16x64xf32>, vector<64x128xf32>, vector<16x128xf32> -> vector<16x128xf32>
    %43 = arith.addf %38, %42 : vector<16x128xf32>
    %cst_32 = arith.constant dense<0.000000e+00> : vector<128xf32>
    %44 = vector.multi_reduction <add>, %43, %cst_32 [0] : vector<16x128xf32> to vector<128xf32>
    %45 = vector.shape_cast %44 : vector<128xf32> to vector<1x128xf32>
    %46 = arith.mulf %43, %43 : vector<16x128xf32>
    %cst_33 = arith.constant dense<0.000000e+00> : vector<128xf32>
    %47 = vector.multi_reduction <add>, %46, %cst_33 [0] : vector<16x128xf32> to vector<128xf32>
    %48 = vector.shape_cast %47 : vector<128xf32> to vector<1x128xf32>
    %49 = vector.broadcast %45 : vector<1x128xf32> to vector<8x128xf32>
    %50 = arith.mulf %20, %49 : vector<8x128xf32>
    %cst_34 = arith.constant dense<0.000000e+00> : vector<8xf32>
    %51 = vector.multi_reduction <add>, %50, %cst_34 [1] : vector<8x128xf32> to vector<8xf32>
    %52 = vector.shape_cast %51 : vector<8xf32> to vector<8x1xf32>
    %cst_35 = arith.constant 3.906250e-03 : f32
    %53 = vector.broadcast %cst_35 : f32 to vector<8x1xf32>
    %54 = arith.mulf %52, %53 : vector<8x1xf32>
    %55 = vector.broadcast %48 : vector<1x128xf32> to vector<8x128xf32>
    %56 = arith.mulf %20, %55 : vector<8x128xf32>
    %cst_36 = arith.constant dense<0.000000e+00> : vector<8xf32>
    %57 = vector.multi_reduction <add>, %56, %cst_36 [1] : vector<8x128xf32> to vector<8xf32>
    %58 = vector.shape_cast %57 : vector<8xf32> to vector<8x1xf32>
    %cst_37 = arith.constant 3.906250e-03 : f32
    %59 = vector.broadcast %cst_37 : f32 to vector<8x1xf32>
    %60 = arith.mulf %58, %59 : vector<8x1xf32>
    %61 = arith.mulf %54, %54 : vector<8x1xf32>
    %62 = arith.subf %60, %61 : vector<8x1xf32>
    %cst_38 = arith.constant 9.99999974E-6 : f32
    %63 = vector.broadcast %cst_38 : f32 to vector<8x1xf32>
    %64 = arith.addf %62, %63 : vector<8x1xf32>
    %65 = math.rsqrt %64 : vector<8x1xf32>
    %66 = vector.broadcast %54 : vector<8x1xf32> to vector<8x128xf32>
    %67 = arith.mulf %20, %66 : vector<8x128xf32>
    %cst_39 = arith.constant dense<0.000000e+00> : vector<128xf32>
    %68 = vector.multi_reduction <add>, %67, %cst_39 [0] : vector<8x128xf32> to vector<128xf32>
    %69 = vector.shape_cast %68 : vector<128xf32> to vector<1x128xf32>
    %70 = vector.broadcast %65 : vector<8x1xf32> to vector<8x128xf32>
    %71 = arith.mulf %20, %70 : vector<8x128xf32>
    %cst_40 = arith.constant dense<0.000000e+00> : vector<128xf32>
    %72 = vector.multi_reduction <add>, %71, %cst_40 [0] : vector<8x128xf32> to vector<128xf32>
    %73 = vector.shape_cast %72 : vector<128xf32> to vector<1x128xf32>
    %74 = arith.mulf %73, %28 : vector<1x128xf32>
    %75 = arith.mulf %69, %74 : vector<1x128xf32>
    %76 = arith.subf %29, %75 : vector<1x128xf32>
    %77 = vector.broadcast %74 : vector<1x128xf32> to vector<16x128xf32>
    %78 = arith.mulf %43, %77 : vector<16x128xf32>
    %79 = vector.broadcast %76 : vector<1x128xf32> to vector<16x128xf32>
    %80 = arith.addf %78, %79 : vector<16x128xf32>
    %cst_41 = arith.constant 2.000000e-01 : f32
    %81 = vector.broadcast %cst_41 : f32 to vector<16x128xf32>
    %82 = arith.mulf %81, %80 : vector<16x128xf32>
    %83 = arith.maximumf %80, %82 : vector<16x128xf32>
    %c1_42 = arith.constant 1 : index
    %c0_43 = arith.constant 0 : index
    %84 = vector.load %arg10[%c1_42, %c0_43] : memref<18x128xf32, #tpu.memory_space<vmem>>, vector<16x128xf32>
    tpu.vector_store %arg10[%c1_42, %c0_43], %83 {strides = array<i32>} : memref<18x128xf32, #tpu.memory_space<vmem>>, vector<16x128xf32>,
    %c2_44 = arith.constant 2 : index
    %c0_45 = arith.constant 0 : index
    %85 = vector.load %arg10[%c2_44, %c0_45] : memref<18x128xf32, #tpu.memory_space<vmem>>, vector<1x128xf32>
    %c0_46 = arith.constant 0 : index
    %c0_47 = arith.constant 0 : index
    %86 = vector.load %arg10[%c0_46, %c0_47] : memref<18x128xf32, #tpu.memory_space<vmem>>, vector<1x128xf32>
    tpu.vector_store %arg10[%c0_46, %c0_47], %85 {strides = array<i32>} : memref<18x128xf32, #tpu.memory_space<vmem>>, vector<1x128xf32>,
    %c15_48 = arith.constant 15 : index
    %c0_49 = arith.constant 0 : index
    %87 = vector.load %arg10[%c15_48, %c0_49] : memref<18x128xf32, #tpu.memory_space<vmem>>, vector<1x128xf32>
    %c17_50 = arith.constant 17 : index
    %c0_51 = arith.constant 0 : index
    %88 = vector.load %arg10[%c17_50, %c0_51] : memref<18x128xf32, #tpu.memory_space<vmem>>, vector<1x128xf32>
    tpu.vector_store %arg10[%c17_50, %c0_51], %87 {strides = array<i32>} : memref<18x128xf32, #tpu.memory_space<vmem>>, vector<1x128xf32>,
    %c0_52 = arith.constant 0 : index
    %c0_53 = arith.constant 0 : index
    %89 = vector.load %arg6[%c0_52, %c0_53] : memref<1x128xf32, #tpu.memory_space<vmem>>, vector<1x128xf32>
    %c0_54 = arith.constant 0 : index
    %c0_55 = arith.constant 0 : index
    %90 = vector.load %arg7[%c0_54, %c0_55] : memref<1x128xf32, #tpu.memory_space<vmem>>, vector<1x128xf32>
    %c0_56 = arith.constant 0 : index
    %c0_57 = arith.constant 0 : index
    %91 = vector.load %arg10[%c0_56, %c0_57] : memref<18x128xf32, #tpu.memory_space<vmem>>, vector<16x128xf32>
    %c0_58 = arith.constant 0 : index
    %c0_59 = arith.constant 0 : index
    %c0_60 = arith.constant 0 : index
    %92 = vector.load %arg5[%c0_58, %c0_59, %c0_60] : memref<3x128x128xf32, #tpu.memory_space<vmem>>, vector<1x128x128xf32>
    %93 = vector.shape_cast %92 : vector<1x128x128xf32> to vector<128x128xf32>
    %cst_61 = arith.constant dense<0.000000e+00> : vector<16x128xf32>
    %94 = tpu.matmul %91, %93, %cst_61 {dimension_numbers = #tpu.dot_dimension_numbers<[1], [0], [0], [1], [0, 0, 1, 1], [], []>} : vector<16x128xf32>, vector<128x128xf32>, vector<16x128xf32> -> vector<16x128xf32>
    %c1_62 = arith.constant 1 : index
    %c0_63 = arith.constant 0 : index
    %95 = vector.load %arg10[%c1_62, %c0_63] : memref<18x128xf32, #tpu.memory_space<vmem>>, vector<16x128xf32>
    %c1_64 = arith.constant 1 : index
    %c0_65 = arith.constant 0 : index
    %c0_66 = arith.constant 0 : index
    %96 = vector.load %arg5[%c1_64, %c0_65, %c0_66] : memref<3x128x128xf32, #tpu.memory_space<vmem>>, vector<1x128x128xf32>
    %97 = vector.shape_cast %96 : vector<1x128x128xf32> to vector<128x128xf32>
    %cst_67 = arith.constant dense<0.000000e+00> : vector<16x128xf32>
    %98 = tpu.matmul %95, %97, %cst_67 {dimension_numbers = #tpu.dot_dimension_numbers<[1], [0], [0], [1], [0, 0, 1, 1], [], []>} : vector<16x128xf32>, vector<128x128xf32>, vector<16x128xf32> -> vector<16x128xf32>
    %99 = arith.addf %94, %98 : vector<16x128xf32>
    %c2_68 = arith.constant 2 : index
    %c0_69 = arith.constant 0 : index
    %100 = vector.load %arg10[%c2_68, %c0_69] : memref<18x128xf32, #tpu.memory_space<vmem>>, vector<16x128xf32>
    %c2_70 = arith.constant 2 : index
    %c0_71 = arith.constant 0 : index
    %c0_72 = arith.constant 0 : index
    %101 = vector.load %arg5[%c2_70, %c0_71, %c0_72] : memref<3x128x128xf32, #tpu.memory_space<vmem>>, vector<1x128x128xf32>
    %102 = vector.shape_cast %101 : vector<1x128x128xf32> to vector<128x128xf32>
    %cst_73 = arith.constant dense<0.000000e+00> : vector<16x128xf32>
    %103 = tpu.matmul %100, %102, %cst_73 {dimension_numbers = #tpu.dot_dimension_numbers<[1], [0], [0], [1], [0, 0, 1, 1], [], []>} : vector<16x128xf32>, vector<128x128xf32>, vector<16x128xf32> -> vector<16x128xf32>
    %104 = arith.addf %99, %103 : vector<16x128xf32>
    %cst_74 = arith.constant dense<0.000000e+00> : vector<128xf32>
    %105 = vector.multi_reduction <add>, %104, %cst_74 [0] : vector<16x128xf32> to vector<128xf32>
    %106 = vector.shape_cast %105 : vector<128xf32> to vector<1x128xf32>
    %107 = arith.mulf %104, %104 : vector<16x128xf32>
    %cst_75 = arith.constant dense<0.000000e+00> : vector<128xf32>
    %108 = vector.multi_reduction <add>, %107, %cst_75 [0] : vector<16x128xf32> to vector<128xf32>
    %109 = vector.shape_cast %108 : vector<128xf32> to vector<1x128xf32>
    %110 = vector.broadcast %106 : vector<1x128xf32> to vector<8x128xf32>
    %111 = arith.mulf %20, %110 : vector<8x128xf32>
    %cst_76 = arith.constant dense<0.000000e+00> : vector<8xf32>
    %112 = vector.multi_reduction <add>, %111, %cst_76 [1] : vector<8x128xf32> to vector<8xf32>
    %113 = vector.shape_cast %112 : vector<8xf32> to vector<8x1xf32>
    %cst_77 = arith.constant 3.906250e-03 : f32
    %114 = vector.broadcast %cst_77 : f32 to vector<8x1xf32>
    %115 = arith.mulf %113, %114 : vector<8x1xf32>
    %116 = vector.broadcast %109 : vector<1x128xf32> to vector<8x128xf32>
    %117 = arith.mulf %20, %116 : vector<8x128xf32>
    %cst_78 = arith.constant dense<0.000000e+00> : vector<8xf32>
    %118 = vector.multi_reduction <add>, %117, %cst_78 [1] : vector<8x128xf32> to vector<8xf32>
    %119 = vector.shape_cast %118 : vector<8xf32> to vector<8x1xf32>
    %cst_79 = arith.constant 3.906250e-03 : f32
    %120 = vector.broadcast %cst_79 : f32 to vector<8x1xf32>
    %121 = arith.mulf %119, %120 : vector<8x1xf32>
    %122 = arith.mulf %115, %115 : vector<8x1xf32>
    %123 = arith.subf %121, %122 : vector<8x1xf32>
    %cst_80 = arith.constant 9.99999974E-6 : f32
    %124 = vector.broadcast %cst_80 : f32 to vector<8x1xf32>
    %125 = arith.addf %123, %124 : vector<8x1xf32>
    %126 = math.rsqrt %125 : vector<8x1xf32>
    %127 = vector.broadcast %115 : vector<8x1xf32> to vector<8x128xf32>
    %128 = arith.mulf %20, %127 : vector<8x128xf32>
    %cst_81 = arith.constant dense<0.000000e+00> : vector<128xf32>
    %129 = vector.multi_reduction <add>, %128, %cst_81 [0] : vector<8x128xf32> to vector<128xf32>
    %130 = vector.shape_cast %129 : vector<128xf32> to vector<1x128xf32>
    %131 = vector.broadcast %126 : vector<8x1xf32> to vector<8x128xf32>
    %132 = arith.mulf %20, %131 : vector<8x128xf32>
    %cst_82 = arith.constant dense<0.000000e+00> : vector<128xf32>
    %133 = vector.multi_reduction <add>, %132, %cst_82 [0] : vector<8x128xf32> to vector<128xf32>
    %134 = vector.shape_cast %133 : vector<128xf32> to vector<1x128xf32>
    %135 = arith.mulf %134, %89 : vector<1x128xf32>
    %136 = arith.mulf %130, %135 : vector<1x128xf32>
    %137 = arith.subf %90, %136 : vector<1x128xf32>
    %138 = vector.broadcast %135 : vector<1x128xf32> to vector<16x128xf32>
    %139 = arith.mulf %104, %138 : vector<16x128xf32>
    %140 = vector.broadcast %137 : vector<1x128xf32> to vector<16x128xf32>
    %141 = arith.addf %139, %140 : vector<16x128xf32>
    %cst_83 = arith.constant 2.000000e-01 : f32
    %142 = vector.broadcast %cst_83 : f32 to vector<16x128xf32>
    %143 = arith.mulf %142, %141 : vector<16x128xf32>
    %144 = arith.maximumf %141, %143 : vector<16x128xf32>
    %145 = vector.shape_cast %144 : vector<16x128xf32> to vector<1x16x128xf32>
    %c0_84 = arith.constant 0 : index
    %c0_85 = arith.constant 0 : index
    %c0_86 = arith.constant 0 : index
    %146 = vector.load %arg8[%c0_84, %c0_85, %c0_86] : memref<1x16x128xf32, #tpu.memory_space<vmem>>, vector<1x16x128xf32>
    tpu.vector_store %arg8[%c0_84, %c0_85, %c0_86], %145 {strides = array<i32>} : memref<1x16x128xf32, #tpu.memory_space<vmem>>, vector<1x16x128xf32>,
    return
  }
  func.func @transform_0(%arg0: i32) -> (i32, i32, i32) {
    %c0_i32 = arith.constant 0 : i32
    %c0_i32_0 = arith.constant 0 : i32
    %c0_i32_1 = arith.constant 0 : i32
    return %arg0, %c0_i32, %c0_i32_0 : i32, i32, i32
  }
  func.func @transform_1(%arg0: i32) -> (i32, i32, i32) {
    %c0_i32 = arith.constant 0 : i32
    %c0_i32_0 = arith.constant 0 : i32
    %c0_i32_1 = arith.constant 0 : i32
    %c0_i32_2 = arith.constant 0 : i32
    return %c0_i32, %c0_i32_0, %c0_i32_1 : i32, i32, i32
  }
  func.func @transform_2(%arg0: i32) -> (i32, i32) {
    %c0_i32 = arith.constant 0 : i32
    %c0_i32_0 = arith.constant 0 : i32
    %c0_i32_1 = arith.constant 0 : i32
    return %c0_i32, %c0_i32_0 : i32, i32
  }
  func.func @transform_3(%arg0: i32) -> (i32, i32) {
    %c0_i32 = arith.constant 0 : i32
    %c0_i32_0 = arith.constant 0 : i32
    %c0_i32_1 = arith.constant 0 : i32
    return %c0_i32, %c0_i32_0 : i32, i32
  }
  func.func @transform_4(%arg0: i32) -> (i32, i32, i32) {
    %c0_i32 = arith.constant 0 : i32
    %c0_i32_0 = arith.constant 0 : i32
    %c0_i32_1 = arith.constant 0 : i32
    %c0_i32_2 = arith.constant 0 : i32
    return %c0_i32, %c0_i32_0, %c0_i32_1 : i32, i32, i32
  }
  func.func @transform_5(%arg0: i32) -> (i32, i32) {
    %c0_i32 = arith.constant 0 : i32
    %c0_i32_0 = arith.constant 0 : i32
    %c0_i32_1 = arith.constant 0 : i32
    return %c0_i32, %c0_i32_0 : i32, i32
  }
  func.func @transform_6(%arg0: i32) -> (i32, i32) {
    %c0_i32 = arith.constant 0 : i32
    %c0_i32_0 = arith.constant 0 : i32
    %c0_i32_1 = arith.constant 0 : i32
    return %c0_i32, %c0_i32_0 : i32, i32
  }
  func.func @transform_7(%arg0: i32) -> (i32, i32, i32) {
    %c0_i32 = arith.constant 0 : i32
    %c0_i32_0 = arith.constant 0 : i32
    %c0_i32_1 = arith.constant 0 : i32
    return %arg0, %c0_i32, %c0_i32_0 : i32, i32, i32
  }
}

</mosaic_0001>

<bundles_post_ra>
// kernel: tpu_custom_call.1
= control target key start
LH: loop header
LB: loop body
LE: loop exit
PB: predicated region body
PF: predicated region fallthrough
CT: control target
= control target key end

     0   :  { %s1966_s0 = inlined_call_operand.hbm [shape: f32[2,16,64], index: 0, kind: input, shape index: {}]   ;;  %s1967_s1 = inlined_call_operand.hbm [shape: f32[3,64,128], index: 1, kind: input, shape index: {}]   ;;  %s1968_s2 = inlined_call_operand.vmem [shape: f32[1,128], index: 2, kind: input, shape index: {}]   ;;  %s1969_s3 = inlined_call_operand.vmem [shape: f32[1,128], index: 3, kind: input, shape index: {}]   ;;  %s1970_s4 = inlined_call_operand.hbm [shape: f32[3,128,128], index: 4, kind: input, shape index: {}]   ;;  %s1971_s5 = inlined_call_operand.vmem [shape: f32[1,128], index: 5, kind: input, shape index: {}]   ;;  %s1972_s6 = inlined_call_operand.vmem [shape: f32[1,128], index: 6, kind: input, shape index: {}]   ;;  %s1973_s7 = inlined_call_operand.hbm [shape: f32[2,16,128], index: 7, kind: output, shape index: {}]  }
   0x1   :  { %1980 = sst [smem:[#allocation14_spill]] %s1967_s1 }
   0x2   :  { %12 = vsyncpa [#allocation5], 0 }
   0x3   :  { %14 = vsyncpa [#allocation5 + $0x1], 0 }
   0x4   :  { %15 = vsyncpa [#allocation8], 0 }
   0x5   :  { %16 = vsyncpa [#allocation6], 0 }
   0x6   :  { %18 = vsyncpa [#allocation6 + $0x1], 0  ;;  %s1707_s24 = smov 0   ;;  %s1709_s25 = smov 0  }
   0x7   :  { %s1711_s26 = smov 0   ;;  %s1713_s27 = smov 0  }
   0x8 LB: > { %s1728_s28 = sadd.s32 4294967295, %s1656_s27   ;;  %s1159_s29 = sadd.s32 4294967294, %s1656_s27   ;;  %s1656_s27 = sphi %s1713_s27, %s2000_s27   ;;  %s1652_s26 = sphi %s1711_s26, %s1999_s26   ;;  %s1648_s25 = sphi %s1709_s25, %s1998_s25   ;;  %s1644_s24 = sphi %s1707_s24, %s1997_s24  }
   0x9   : > { %p44_p0 = scmp.ne.s32.totalorder %s1648_s25, %s1644_s24  ;;  %p1975_p1 = scmp.eq.s32.totalorder %s1728_s28, 0 }
   0xa   : > { %p194_p2 = scmp.eq.s32.totalorder %s1728_s28, 1  ;;  %p200_p3 = scmp.eq.s32.totalorder %s1159_s29, 1 }
   0xb   : > { %p1737_p4 = por %p1975_p1, %p44_p0  ;;  %p1160_p5 = scmp.ge.s32.totalorder %s1656_s27, 1 }
   0xc   : > { %p1742_p6 = por %p200_p3, %p44_p0  ;;  %p207_p7 = scmp.lt.s32.totalorder %s1656_s27, 3 }
   0xd   : > { %s1981_s30 = scalar_select %p1737_p4, 1, 0 }
   0xe   : > { %s1982_s8 = scalar_select %p1742_p6, 1, 0 }
   0xf   : > { %p1747_p8 = pnand %p1160_p5, %p207_p7  ;;  %s1658_s10 = smov [#allocation7]  }
  0x10   : > { %s219_s11 = sshll.u32 %s1658_s10, 4  ;;  %s1659_s13 = smov [#allocation9]   ;;  %s220_s11 = int_to_ptr.vmem [resolvable:$true] %s219_s11 }
  0x11   : > { %s1983_s9 = scalar_select %p1747_p8, 1, 0 }
  0x12   : > { %p1444_p9 = pneg %p1747_p8  ;;  %s238_s14 = sshll.u32 %s1659_s13, 4  ;;  %s239_s14 = int_to_ptr.vmem [resolvable:$true] %s238_s14 }
  0x13   : > { %s1519_s15 = scalar_lea.vmem %s220_s11, 3072  ;;  %p1527_p5 = scmp.lt.s32.totalorder %s220_s11, %s220_s11 }
  0x14   : > { %p1756_p11 = pnand %p1444_p9, %p1975_p1  ;;  %p1520_p13 = scmp.ne.s32.totalorder %s220_s11, %s1519_s15 }
  0x15   : > { %p1528_p7 = scmp.lt.s32.totalorder %s1519_s15, %s1519_s15 }
  0x16   : > { %p1510_p12 = pneg %p1756_p11 }
  0x17   : > { %p1529_p10 = por %p1528_p7, %p1527_p5 }
  0x18   : > { %p1522_p0 = pnand %p1520_p13, %p1510_p12 }
  0x1a   : > { %p1523_p3 = pneg %p1522_p0 }
  0x1c   : > { %p1530_p9 = pnand %p1529_p10, %p1523_p3 }
  0x1e   : > { %1533 = shalt.err (!%p1530_p9)
}
  0x1f   : > { %s1974_s16 = smov 128   ;;  %s1976_s17 = smov 8  }
  0x20   : > { %s1985_s1 = sld [smem:[#allocation14_spill]]  ;;  %s1545_s20 = scalar_lea.vmem %s239_s14, 6144 }
  0x21   : > { %p1546_p13 = scmp.ne.s32.totalorder %s239_s14, %s1545_s20  ;;  %p1553_p10 = scmp.lt.s32.totalorder %s239_s14, %s239_s14 }
  0x22   : > { %p1554_p3 = scmp.lt.s32.totalorder %s1545_s20, %s1545_s20 }
  0x23   : > { %p1548_p0 = pnand %p1546_p13, %p1510_p12 }
  0x24   : > { %p1555_p7 = por %p1554_p3, %p1553_p10 }
  0x25   : > { %p1549_p5 = pneg %p1548_p0 }
  0x26   : > { %1447 = dma.hbm_to_vmem [thread:$0]  (!%p1756_p11), %s1985_s1, 3072, %s220_s11, [#allocation8], %s1974_s16, %s1974_s16, %s1976_s17  }
  0x27   : > { %p1556_p9 = pnand %p1555_p7, %p1549_p5 }
  0x29   : > { %1559 = shalt.err (!%p1556_p9)
}
  0x2a   : > { %1450 = dma.hbm_to_vmem [thread:$0]  (!%p1756_p11), %s1970_s4, 6144, %s239_s14, [#allocation8], %s1974_s16, %s1974_s16, %s1976_s17  }
  0x2b   : > { %s1785_s23 = sadd.s32 1, %s1656_s27   ;;  %s31_s29 = sadd.s32 1, %s1652_s26 }
  0x2c   : > { %s28_s10 = ssub.s32 %s1656_s27, %s1785_s23  ;;  %p38_p12 = scmp.ne.s32.totalorder %s1652_s26, %s1648_s25 }
  0x2d   : > { %p29_p13 = scmp.eq.s32.totalorder %s28_s10, 0  ;;  %p39_p0 = scmp.eq.s32.totalorder %s1656_s27, 0 }
  0x2e   : > { %p1795_p5 = por %p194_p2, %p38_p12  ;;  %p1461_p10 = scmp.lt.s32.totalorder %s1656_s27, 2 }
  0x2f   : > { %s1801_s12 = scalar_select %p29_p13, %s1652_s26, %s31_s29  }
  0x30   : > { %s1986_s11 = scalar_select %p1795_p5, 1, 0 }
  0x31   : > { %p40_p3 = por %p39_p0, %p38_p12  ;;  %s258_s13 = sand.u32 1, %s1652_s26  }
  0x32   : > { %s1164_s15 = sshll.u32 %s258_s13, 4  ;;  %s1184_s14 = sshll.u32 %s1656_s27, 8 }
  0x33   : > { %s1808_s20 = scalar_lea.hbm %s1966_s0, %s1184_s14  ;;  %s262_s21 = scalar_lea.vmem [#allocation4], %s1164_s15 }
  0x34   : > { %s269_s22 = sshll.u32 %s262_s21, 4  ;;  %p1812_p2 = pnand %p1461_p10, %p40_p3  ;;  %s1810_s22 = int_to_ptr.vmem [resolvable:$true] %s269_s22 }
  0x35   : > { %s1816_s29 = scalar_lea.sflag [#allocation5], %s258_s13  ;;  %s1560_s16 = scalar_lea.hbm %s1808_s20, 256 }
  0x36   : > { %p1561_p11 = scmp.ne.s32.totalorder %s1808_s20, %s1560_s16  ;;  %p1562_p7 = pneg %p1812_p2 }
  0x37   : > { %s1565_s15 = scalar_lea.hbm %s1966_s0, 512  ;;  %p1566_p13 = scmp.lt.s32.totalorder %s1808_s20, %s1966_s0 }
  0x38   : > { %p1563_p9 = pnand %p1562_p7, %p1561_p11  ;;  %p1567_p0 = scmp.lt.s32.totalorder %s1565_s15, %s1560_s16 }
  0x3a   : > { %p1564_p12 = pneg %p1563_p9  ;;  %p1568_p10 = por %p1567_p0, %p1566_p13 }
  0x3c   : > { %p1569_p3 = pnand %p1568_p10, %p1564_p12 }
  0x3e   : > { %1572 = shalt.err (!%p1569_p3)
}
  0x3f   : > { %s1573_s13 = scalar_lea.vmem %s1810_s22, 256  ;;  %s1662_s17 = smov [#allocation4]  }
  0x40   : > { %p1574_p1 = scmp.ne.s32.totalorder %s1810_s22, %s1573_s13  ;;  %s1578_s1 = sshll.u32 %s1662_s17, 4  ;;  %s1579_s1 = int_to_ptr.vmem [resolvable:$false] %s1578_s1 }
  0x41   : > { %s1580_s14 = scalar_lea.vmem %s1579_s1, 512  ;;  %p1581_p9 = scmp.lt.s32.totalorder %s1810_s22, %s1579_s1 }
  0x42   : > { %p1576_p6 = pnand %p1574_p1, %p1562_p7  ;;  %p1582_p5 = scmp.lt.s32.totalorder %s1580_s14, %s1573_s13 }
  0x44   : > { %p1577_p11 = pneg %p1576_p6  ;;  %p1583_p4 = por %p1582_p5, %p1581_p9 }
  0x46   : > { %p1584_p8 = pnand %p1583_p4, %p1577_p11 }
  0x48   : > { %1587 = shalt.err (!%p1584_p8)
}
  0x49   : > { %s1988_s16 = smov 8   ;;  %s1989_s18 = smov 128  }
  0x4a   : > { %1454 = dma.hbm_to_vmem [thread:$0]  (!%p1812_p2), %s1808_s20, 256, %s1810_s22, %s1816_s29, %s1989_s18, %s1989_s18, %s1988_s16  }
  0x4b   : > { %p1990_p1 = scmp.ne.s32.totalorder %s1983_s9, 0 }
  0x4c   : > { %s1843_s17 = sand.u32 (!%p1990_p1), 1, %s1648_s25   ;;  %p1991_p4 = scmp.ne.s32.totalorder (!%p1990_p1), %s1981_s30, 0 }
  0x4d   : > { %281 = sbr.rel (%p1990_p1) target bundleno = 973 (0x3cd), region = 48  ;;  %s1168_s1 = sshll.u32 (!%p1990_p1), %s1843_s17, 4 }
  0x4e   : > { %s284_s15 = scalar_lea.sflag (!%p1990_p1), [#allocation5], %s1843_s17  ;;  %s287_s10 = scalar_lea.vmem (!%p1990_p1), [#allocation4], %s1168_s1 }
  0x52   : > { %1631 = dma.done.wait (%p1991_p4), %s284_s15, 256  }
  0x53   : > { %1633 = vsyncadd (%p1991_p4), %s284_s15, 4294967040  ;;  %p1992_p6 = scmp.eq.s32.totalorder %s1728_s28, 0 }
  0x55   : > { %1635 = dma.done.wait (%p1992_p6), [#allocation8], 9216   ;;  %p1993_p8 = pmov %p1992_p6 }
  0x56   : > { %v377_v0 = vld [vmem:[#allocation7 + $0x78] sm:$0xff]  ;;  %v376_v2 = vld [vmem:[#allocation7 + $0x70] sm:$0xff]  ;;  %v375_v4 = vld [vmem:[#allocation7 + $0x68] sm:$0xff]  ;;  %vm347_vm0 = vcmask 523264   ;;  %vm351_vm1 = vcmask 516096   ;;  %v326_v42 = vlaneseq  ;;  %v1663_v61 = vmov 0.0  }
  0x57   : > { %1637 = vsyncadd (%p1993_p8), [#allocation8], 4294958080  ;;  %v366_v1 = vld [vmem:[#allocation7 + $0x38] sm:$0xff]  ;;  %1270 = vmatprep.subr.mxu0 %v377_v0  ;;  %v365_v3 = vld [vmem:[#allocation7 + $0x30] sm:$0xff]  ;;  %s1185_s14 = sshll.u32 %s1728_s28, 8  ;;  %s325_s16 = scalar_lea.vmem [#allocation10], %s1168_s1 }
  0x58   : > { %1289 = vmatprep.subr.mxu1 %v366_v1  ;;  %1271 = vmatpush3.msra.mxu0 %v377_v0  ;;  %v364_v5 = vld [vmem:[#allocation7 + $0x28] sm:$0xff]  ;;  %v374_v6 = vld [vmem:[#allocation7 + $0x60] sm:$0xff]  ;;  %v373_v10 = vld [vmem:[#allocation7 + $0x58] sm:$0xff]  ;;  %v327_v48 = vand.u32 127, %v326_v42  ;;  %v1877_v53 = vshrl.u32 %v326_v42, 7  ;;  %s1067_s18 = sshll.u32 %s325_s16, 4  ;;  %s1921_s30 = scalar_lea.hbm %s1973_s7, %s1185_s14  ;;  %s1923_s18 = int_to_ptr.vmem [resolvable:$true] %s1067_s18 }
  0x59   : > { %1290 = vmatpush3.msra.mxu1 %v366_v1  ;;  %1272 = vmatprep.subr.mxu0 %v376_v2  ;;  %v363_v7 = vld [vmem:[#allocation7 + $0x20] sm:$0xff]  ;;  %v346_v9 = vld [vmem:[%s287_s10 + $0x8] sm:$0xff]  ;;  %v372_v12 = vld [vmem:[#allocation7 + $0x50] sm:$0xff]  ;;  %s1054_s28 = scalar_lea.sflag [#allocation6], %s1843_s17  ;;  %s1588_s9 = scalar_lea.vmem %s1923_s18, 256 }
  0x5a   : > { %1291 = vmatprep.subr.mxu1 %v365_v3  ;;  %1273 = vmatpush3.msra.mxu0 %v376_v2  ;;  %v345_v8 = vld [vmem:[%s287_s10] sm:$0xff]  ;;  %v362_v11 = vld [vmem:[#allocation7 + $0x18] sm:$0xff]  ;;  %349 = vst.msk [vmem:[#allocation2 + $0x9] sm:$0xff] %vm347_vm0, %v346_v9  ;;  %v371_v14 = vld [vmem:[#allocation7 + $0x48] sm:$0xff]  ;;  %v332_v52 = vand.u32 7, %v327_v48  ;;  %p1589_p5 = scmp.ne.s32.totalorder %s1923_s18, %s1588_s9  ;;  %p1994_p2 = scmp.ne.s32.totalorder %s1986_s11, 0 }
  0x5b   : > { %1292 = vmatpush3.msra.mxu1 %v365_v3  ;;  %1274 = vmatprep.subr.mxu0 %v375_v4  ;;  %348 = vst.msk [vmem:[#allocation2 + $0x1] sm:$0xff] %vm347_vm0, %v345_v8  ;;  %v361_v13 = vld [vmem:[#allocation7 + $0x10] sm:$0xff]  ;;  %v360_v15 = vld [vmem:[#allocation7 + $0x8] sm:$0xff]  ;;  %v370_v16 = vld [vmem:[#allocation7 + $0x40] sm:$0xff]  ;;  %s1664_s1 = smov [#allocation10]  }
  0x5c   : > { %1293 = vmatprep.subr.mxu1 %v364_v5  ;;  %1275 = vmatpush3.msra.mxu0 %v375_v4  ;;  %v359_v18 = vld [vmem:[#allocation7] sm:$0xff]  ;;  %v550_v22 = vld [vmem:[#allocation7 + $0xb8] sm:$0xff]  ;;  %v549_v24 = vld [vmem:[#allocation7 + $0xb0] sm:$0xff]  ;;  %vm342_vm2 = vcmp.eq.s32.totalorder %v332_v52, %v1877_v53  ;;  %p1590_p7 = pnand %p1589_p5, %p1994_p2  ;;  %s1592_s20 = sshll.u32 %s1664_s1, 4  ;;  %s1593_s20 = int_to_ptr.vmem [resolvable:$false] %s1592_s20 }
  0x5d   : > { %1294 = vmatpush3.msra.mxu1 %v364_v5  ;;  %1276 = vmatprep.subr.mxu0 %v374_v6  ;;  %v548_v25 = vld [vmem:[#allocation7 + $0xa8] sm:$0xff]  ;;  %v547_v28 = vld [vmem:[#allocation7 + $0xa0] sm:$0xff]  ;;  %v546_v29 = vld [vmem:[#allocation7 + $0x98] sm:$0xff]  ;;  %v1880_v62 = vsel %vm342_vm2, 1.0, %v1663_v61  ;;  %v1893_v61 = vsub.s32 0, %v1877_v53  ;;  %s1594_s22 = scalar_lea.vmem %s1593_s20, 512  ;;  %p1595_p13 = scmp.lt.s32.totalorder %s1923_s18, %s1593_s20 }
  0x5e   : > { %1295 = vmatprep.subr.mxu1 %v363_v7  ;;  %1277 = vmatpush3.msra.mxu0 %v374_v6  ;;  %v545_v30 = vld [vmem:[#allocation7 + $0x90] sm:$0xff]  ;;  %v544_v31 = vld [vmem:[#allocation7 + $0x88] sm:$0xff]  ;;  %v543_v32 = vld [vmem:[#allocation7 + $0x80] sm:$0xff]  ;;  %p1591_p12 = pneg %p1590_p7  ;;  %p1596_p0 = scmp.lt.s32.totalorder %s1594_s22, %s1588_s9 }
  0x5f   : > { %1296 = vmatpush3.msra.mxu1 %v363_v7  ;;  %1278 = vmatprep.subr.mxu0 %v373_v10  ;;  %v741_v4 = vld [vmem:[#allocation9 + $0xf8] sm:$0xff]  ;;  %v740_v5 = vld [vmem:[#allocation9 + $0xf0] sm:$0xff]  ;;  %v739_v6 = vld [vmem:[#allocation9 + $0xe8] sm:$0xff] }
  0x60   : > { %1297 = vmatprep.subr.mxu1 %v362_v11  ;;  %1279 = vmatpush3.msra.mxu0 %v373_v10  ;;  %v738_v7 = vld [vmem:[#allocation9 + $0xe0] sm:$0xff]  ;;  %v737_v8 = vld [vmem:[#allocation9 + $0xd8] sm:$0xff]  ;;  %v736_v9 = vld [vmem:[#allocation9 + $0xd0] sm:$0xff]  ;;  %p1597_p10 = por %p1596_p0, %p1595_p13 }
  0x61   : > { %1298 = vmatpush3.msra.mxu1 %v362_v11  ;;  %1280 = vmatprep.subr.mxu0 %v372_v12  ;;  %v368_v20 = vld [vmem:[#allocation2 + $0x9] sm:$0xff]  ;;  %v735_v10 = vld [vmem:[#allocation9 + $0xc8] sm:$0xff] }
  0x62   : > { %1299 = vmatprep.subr.mxu1 %v361_v13  ;;  %1281 = vmatpush3.msra.mxu0 %v372_v12  ;;  %v367_v17 = vld [vmem:[#allocation2 + $0x1] sm:$0xff]  ;;  %v353_v21 = vld [vmem:[#allocation2 + $0xf] sm:$0x1]  ;;  %v734_v11 = vld [vmem:[#allocation9 + $0xc0] sm:$0xff]  ;;  %p1598_p3 = pnand %p1597_p10, %p1591_p12 }
  0x63   : > { %1300 = vmatpush3.msra.mxu1 %v361_v13  ;;  %1282 = vmatprep.subr.mxu0 %v371_v14  ;;  %v350_v19 = vld [vmem:[#allocation2 + $0x2] sm:$0x1]  ;;  %354 = vst.msk [vmem:[#allocation2 + $0x11] sm:$0x1] %vm351_vm1, %v353_v21  ;;  %v358_v26 = vld [vmem:[#allocation2 + $0x8] sm:$0xff] }
  0x64   : > { %1301 = vmatprep.subr.mxu1 %v360_v15  ;;  %1283 = vmatpush3.msra.mxu0 %v371_v14  ;;  %352 = vst.msk [vmem:[#allocation2] sm:$0x1] %vm351_vm1, %v350_v19  ;;  %v540_v23 = vld [vmem:[#allocation2 + $0x2] sm:$0xff]  ;;  %v719_v19 = vld [vmem:[#allocation9 + $0x60] sm:$0xff] }
  0x65   : > { %1302 = vmatpush3.msra.mxu1 %v360_v15  ;;  %1284 = vmatprep.subr.mxu0 %v370_v16  ;;  %v733_v12 = vld [vmem:[#allocation9 + $0xb8] sm:$0xff]  ;;  %v732_v14 = vld [vmem:[#allocation9 + $0xb0] sm:$0xff] }
  0x66   : > { %1286 = vmatprep.mubr.msk.f32.mxu0 %vm347_vm0, %v367_v17  ;;  %1285 = vmatpush3.msra.mxu0 %v370_v16  ;;  %v722_v13 = vld [vmem:[#allocation9 + $0x78] sm:$0xff]  ;;  %v721_v15 = vld [vmem:[#allocation9 + $0x70] sm:$0xff]  ;;  %v731_v16 = vld [vmem:[#allocation9 + $0xa8] sm:$0xff] }
  0x67   : > { %1303 = vmatprep.subr.mxu1 %v359_v18  ;;  %1287 = vmatmul.mubr.msk.f32.vlgmr.msra.gmra.mxu0 %vm347_vm0, %v368_v20  ;;  %v720_v17 = vld [vmem:[#allocation9 + $0x68] sm:$0xff]  ;;  %v729_v20 = vld [vmem:[#allocation9 + $0x98] sm:$0xff] }
  0x68   : > { %1304 = vmatpush3.msra.mxu1 %v359_v18  ;;  %1308 = vmatprep.subr.mxu0 %v550_v22  ;;  %v730_v18 = vld [vmem:[#allocation9 + $0xa0] sm:$0xff]  ;;  %v718_v21 = vld [vmem:[#allocation9 + $0x58] sm:$0xff] }
  0x69   : > { %1324 = vmatprep.mubr.msk.f32.mxu0 %vm347_vm0, %v540_v23  ;;  %1309 = vmatpush3.msra.mxu0 %v550_v22  ;;  %v728_v22 = vld [vmem:[#allocation9 + $0x90] sm:$0xff] }
  0x6a   : > { %1310 = vmatprep.subr.mxu0 %v549_v24  ;;  %v541_v33 = vld [vmem:[#allocation2 + $0xa] sm:$0xff]  ;;  %1327 = vmatprep.subr.mxu1 %v741_v4  ;;  %v717_v23 = vld [vmem:[#allocation9 + $0x50] sm:$0xff] }
  0x6b   : > { %v357_v27 = vld [vmem:[#allocation2] sm:$0xff]  ;;  %1311 = vmatpush3.msra.mxu0 %v549_v24  ;;  %v727_v24 = vld [vmem:[#allocation9 + $0x88] sm:$0xff] }
  0x6c   : > { %1305 = vmatprep.mubr.msk.f32.mxu1 %vm347_vm0, %v357_v27  ;;  %1312 = vmatprep.subr.mxu0 %v548_v25  ;;  %v726_v27 = vld [vmem:[#allocation9 + $0x80] sm:$0xff] }
  0x6d   : > { %1306 = vmatmul.mubr.msk.f32.vlgmr.msra.gmra.mxu1 %vm347_vm0, %v358_v26  ;;  %1313 = vmatpush3.msra.mxu0 %v548_v25  ;;  %v716_v25 = vld [vmem:[#allocation9 + $0x48] sm:$0xff]  ;;  %v715_v26 = vld [vmem:[#allocation9 + $0x40] sm:$0xff] }
  0x6e   : > { %1314 = vmatprep.subr.mxu0 %v547_v28  ;;  %1328 = vmatpush3.msra.mxu1 %v741_v4 }
  0x6f   : > { %1315 = vmatpush3.msra.mxu0 %v547_v28  ;;  %1329 = vmatprep.subr.mxu1 %v740_v5  ;;  %v714_v28 = vld [vmem:[#allocation9 + $0x38] sm:$0xff] }
  0x70   : > { %1316 = vmatprep.subr.mxu0 %v546_v29  ;;  %1330 = vmatpush3.msra.mxu1 %v740_v5 }
  0x71   : > { %1317 = vmatpush3.msra.mxu0 %v546_v29  ;;  %1331 = vmatprep.subr.mxu1 %v739_v6  ;;  %v1884_v29 = vld [vmem:[#allocation9 + $0x178] sm:$0xff] }
  0x72   : > { %1318 = vmatprep.subr.mxu0 %v545_v30  ;;  %1332 = vmatpush3.msra.mxu1 %v739_v6 }
  0x73   : > { %1319 = vmatpush3.msra.mxu0 %v545_v30  ;;  %1333 = vmatprep.subr.mxu1 %v738_v7  ;;  %v713_v30 = vld [vmem:[#allocation9 + $0x30] sm:$0xff] }
  0x74   : > { %1320 = vmatprep.subr.mxu0 %v544_v31  ;;  %1334 = vmatpush3.msra.mxu1 %v738_v7 }
  0x75   : > { %1321 = vmatpush3.msra.mxu0 %v544_v31  ;;  %1335 = vmatprep.subr.mxu1 %v737_v8  ;;  %v712_v31 = vld [vmem:[#allocation9 + $0x28] sm:$0xff] }
  0x76   : > { %1322 = vmatprep.subr.mxu0 %v543_v32  ;;  %1336 = vmatpush3.msra.mxu1 %v737_v8 }
  0x77   : > { %1323 = vmatpush3.msra.mxu0 %v543_v32  ;;  %1337 = vmatprep.subr.mxu1 %v736_v9  ;;  %v711_v32 = vld [vmem:[#allocation9 + $0x20] sm:$0xff] }
  0x78   : > { %1325 = vmatmul.mubr.msk.f32.vlgmr.msra.gmra.mxu0 %vm347_vm0, %v541_v33  ;;  %1338 = vmatpush3.msra.mxu1 %v736_v9  ;;  %v710_v33 = vld [vmem:[#allocation9 + $0x18] sm:$0xff] }
  0x79   : > { %1339 = vmatprep.subr.mxu1 %v735_v10  ;;  %1362 = vmatprep.subr.mxu0 %v722_v13 }
  0x7a   : > { %1340 = vmatpush3.msra.mxu1 %v735_v10  ;;  %1363 = vmatpush3.msra.mxu0 %v722_v13 }
  0x7b   : > { %1341 = vmatprep.subr.mxu1 %v734_v11  ;;  %1364 = vmatprep.subr.mxu0 %v721_v15 }
  0x7c   : > { %1342 = vmatpush3.msra.mxu1 %v734_v11  ;;  %1365 = vmatpush3.msra.mxu0 %v721_v15  ;;  %v908_v15 = vld [vmem:[#allocation9 + $0x168] sm:$0xff] }
  0x7d   : > { %1343 = vmatprep.subr.mxu1 %v733_v12  ;;  %1366 = vmatprep.subr.mxu0 %v720_v17 }
  0x7e   : > { %1344 = vmatpush3.msra.mxu1 %v733_v12  ;;  %1367 = vmatpush3.msra.mxu0 %v720_v17 }
  0x7f   : > { %1345 = vmatprep.subr.mxu1 %v732_v14  ;;  %1368 = vmatprep.subr.mxu0 %v719_v19 }
  0x80   : > { %1346 = vmatpush3.msra.mxu1 %v732_v14  ;;  %1369 = vmatpush3.msra.mxu0 %v719_v19  ;;  %v909_v14 = vld [vmem:[#allocation9 + $0x170] sm:$0xff] }
  0x81   : > { %1347 = vmatprep.subr.mxu1 %v731_v16  ;;  %1370 = vmatprep.subr.mxu0 %v718_v21 }
  0x82   : > { %1348 = vmatpush3.msra.mxu1 %v731_v16  ;;  %1371 = vmatpush3.msra.mxu0 %v718_v21  ;;  %v903_v21 = vld [vmem:[#allocation9 + $0x140] sm:$0xff] }
  0x83   : > { %1349 = vmatprep.subr.mxu1 %v730_v18  ;;  %1372 = vmatprep.subr.mxu0 %v717_v23 }
  0x84   : > { %1350 = vmatpush3.msra.mxu1 %v730_v18  ;;  %1373 = vmatpush3.msra.mxu0 %v717_v23  ;;  %v905_v18 = vld [vmem:[#allocation9 + $0x150] sm:$0xff] }
  0x85   : > { %1351 = vmatprep.subr.mxu1 %v729_v20  ;;  %1374 = vmatprep.subr.mxu0 %v716_v25 }
  0x86   : > { %1352 = vmatpush3.msra.mxu1 %v729_v20  ;;  %1375 = vmatpush3.msra.mxu0 %v716_v25  ;;  %v904_v20 = vld [vmem:[#allocation9 + $0x148] sm:$0xff]  ;;  %v901_v25 = vld [vmem:[#allocation9 + $0x130] sm:$0xff] }
  0x87   : > { %1353 = vmatprep.subr.mxu1 %v728_v22  ;;  %1376 = vmatprep.subr.mxu0 %v715_v26 }
  0x88   : > { %1354 = vmatpush3.msra.mxu1 %v728_v22  ;;  %1377 = vmatpush3.msra.mxu0 %v715_v26  ;;  %v902_v22 = vld [vmem:[#allocation9 + $0x138] sm:$0xff]  ;;  %v900_v26 = vld [vmem:[#allocation9 + $0x128] sm:$0xff] }
  0x89   : > { %1355 = vmatprep.subr.mxu1 %v727_v24  ;;  %1378 = vmatprep.subr.mxu0 %v714_v28 }
  0x8a   : > { %1356 = vmatpush3.msra.mxu1 %v727_v24  ;;  %1379 = vmatpush3.msra.mxu0 %v714_v28  ;;  %v898_v28 = vld [vmem:[#allocation9 + $0x118] sm:$0xff] }
  0x8b   : > { %1357 = vmatprep.subr.mxu1 %v726_v27  ;;  %1380 = vmatprep.subr.mxu0 %v713_v30 }
  0x8c   : > { %1358 = vmatpush3.msra.mxu1 %v726_v27  ;;  %1381 = vmatpush3.msra.mxu0 %v713_v30  ;;  %v899_v27 = vld [vmem:[#allocation9 + $0x120] sm:$0xff]  ;;  %v896_v30 = vld [vmem:[#allocation9 + $0x108] sm:$0xff] }
  0x8d   : > { %1397 = vmatprep.subr.mxu1 %v1884_v29  ;;  %1382 = vmatprep.subr.mxu0 %v712_v31 }
  0x8e   : > { %1383 = vmatpush3.msra.mxu0 %v712_v31  ;;  %v895_v31 = vld [vmem:[#allocation9 + $0x100] sm:$0xff] }
  0x8f   : > { %1384 = vmatprep.subr.mxu0 %v711_v32 }
  0x90   : > { %1385 = vmatpush3.msra.mxu0 %v711_v32 }
  0x91   : > { %1386 = vmatprep.subr.mxu0 %v710_v33 }
  0x92   : > { %1387 = vmatpush3.msra.mxu0 %v710_v33 }
 0x127   : > { %v1288_v34 = vpop.f32.mrf.mxu0 }
 0x129   : > { %v450_v36 = vpop.f32.mrf.mxu0 }
 0x12d   : > { %v1307_v35 = vpop.f32.mrf.mxu1 }
 0x12e   : > { %v537_v38 = vadd.f32 %v1307_v35, %v1288_v34  ;;  %v709_v34 = vld [vmem:[#allocation9 + $0x10] sm:$0xff]  ;;  %v708_v35 = vld [vmem:[#allocation9 + $0x8] sm:$0xff] }
 0x12f   : > { %v531_v37 = vpop.f32.mrf.mxu1  ;;  %1388 = vmatprep.subr.mxu0 %v709_v34 }
 0x130   : > { %v532_v40 = vadd.f32 %v531_v37, %v450_v36  ;;  %1389 = vmatpush3.msra.mxu0 %v709_v34  ;;  %v707_v36 = vld [vmem:[#allocation9] sm:$0xff] }
 0x131   : > { %1390 = vmatprep.subr.mxu0 %v708_v35 }
 0x132   : > { %1391 = vmatpush3.msra.mxu0 %v708_v35 }
 0x133   : > { %1392 = vmatprep.subr.mxu0 %v707_v36 }
 0x134   : > { %1393 = vmatpush3.msra.mxu0 %v707_v36 }
 0x138   : > { %v1326_v39 = vpop.f32.mrf.mxu0 }
 0x139   : > { %v1867_v41 = vadd.f32 %v1326_v39, %v537_v38 }
 0x13a   : > { %v623_v43 = vpop.f32.mrf.mxu0 }
 0x13b   : > { %v1869_v44 = vadd.f32 %v623_v43, %v532_v40  ;;  %v642_v45 = vmul.f32 %v1867_v41, %v1867_v41 }
 0x13d   : > { %v634_v46 = vadd.f32 %v1867_v41, %v1869_v44  ;;  %v641_v47 = vmul.f32 %v1869_v44, %v1869_v44 }
 0x13f   : > { %v635_v49 = vrot.slane %v634_v46, 4  ;;  %v643_v50 = vadd.f32 %v642_v45, %v641_v47 }
 0x141   : > { %v644_v51 = vrot.slane %v643_v50, 4  ;;  %v636_v54 = vadd.f32 %v635_v49, %v634_v46 }
 0x143   : > { %v637_v55 = vrot.slane %v636_v54, 2  ;;  %v645_v56 = vadd.f32 %v644_v51, %v643_v50 }
 0x145   : > { %v638_v57 = vadd.f32 %v637_v55, %v636_v54  ;;  %v646_v58 = vrot.slane %v645_v56, 2 }
 0x147   : > { %v639_v59 = vrot.slane %v638_v57, 1  ;;  %v647_v60 = vadd.f32 %v646_v58, %v645_v56 }
 0x149   : > { %v640_v63 = vadd.f32 %v639_v59, %v638_v57  ;;  %v648_v0 = vrot.slane %v647_v60, 1 }
 0x14b   : > { %v650_v1 = vmul.f32 %v1880_v62, %v640_v63  ;;  %v649_v2 = vadd.f32 %v648_v0, %v647_v60  ;;  %v355_v60 = vld [vmem:[%s1968_s2] sm:$0x1] }
 0x14d   : > { %651 = vadd.xlane.f32.xlu0 %v650_v1  ;;  %v654_v3 = vmul.f32 %v1880_v62, %v649_v2  ;;  %v356_v2 = vld [vmem:[%s1969_s3] sm:$0x1] }
 0x151   : > { %655 = vadd.xlane.f32.xlu0 %v654_v3 }
 0x1d6   : > { %v652_v37 = vpop.xlane.xlu0 %651 }
 0x1d7   : > { %v653_v38 = vmul.f32 0.00390625, %v652_v37 }
 0x1d9   : > { %v658_v40 = vmul.f32 %v653_v38, %v653_v38  ;;  %v662_v46 = vmul.f32 %v1880_v62, %v653_v38 }
 0x1da   : > { %v656_v39 = vpop.xlane.xlu0 %655 }
 0x1db   : > { %v657_v42 = vmul.f32 0.00390625, %v656_v39  ;;  %v663_v47 = vrot.slane %v662_v46, 4 }
 0x1dd   : > { %v659_v43 = vsub.f32 %v657_v42, %v658_v40  ;;  %v664_v48 = vadd.f32 %v663_v47, %v662_v46 }
 0x1df   : > { %v660_v45 = vadd.f32 1e-05, %v659_v43  ;;  %v665_v51 = vrot.slane %v664_v48, 2 }
 0x1e1   : > { %1504 = vrsqrt.f32 %v660_v45  ;;  %v666_v55 = vadd.f32 %v665_v51, %v664_v48 }
 0x1e3   : > { %v667_v58 = vrot.slane %v666_v55, 1 }
 0x1e5   : > { %v668_v0 = vadd.f32 %v667_v58, %v666_v55 }
 0x1ee   : > { %v1505_v49 = vpop.eup %1504 }
 0x1ef   : > { %v669_v50 = vmul.f32 %v1505_v49, %v1880_v62 }
 0x1f1   : > { %v670_v52 = vrot.slane %v669_v50, 4 }
 0x1f3   : > { %v671_v54 = vadd.f32 %v670_v52, %v669_v50 }
 0x1f5   : > { %v672_v56 = vrot.slane %v671_v54, 2 }
 0x1f7   : > { %v673_v57 = vadd.f32 %v672_v56, %v671_v54 }
 0x1f9   : > { %v674_v59 = vrot.slane %v673_v57, 1 }
 0x1fb   : > { %v675_v63 = vadd.f32 %v674_v59, %v673_v57 }
 0x1fd   : > { %v676_v1 = vmul.f32 %v675_v63, %v355_v60 }
 0x1ff   : > { %v677_v3 = vmul.f32 %v676_v1, %v668_v0  ;;  %v682_v4 = vrot.slane %v676_v1, %v1893_v61 }
 0x201   : > { %v678_v5 = vsub.f32 %v356_v2, %v677_v3  ;;  %v683_v6 = vmul.f32 %v682_v4, %v1869_v44  ;;  %v684_v7 = vmul.f32 %v682_v4, %v1867_v41  ;;  %v907_v44 = vld [vmem:[#allocation9 + $0x160] sm:$0xff]  ;;  %v906_v41 = vld [vmem:[#allocation9 + $0x158] sm:$0xff] }
 0x203   : > { %v689_v8 = vrot.slane %v678_v5, %v1893_v61 }
 0x205   : > { %v691_v9 = vadd.f32 %v689_v8, %v683_v6  ;;  %v692_v53 = vadd.f32 %v689_v8, %v684_v7 }
 0x207   : > { %v693_v10 = vmul.f32 0.2, %v691_v9  ;;  %v694_v11 = vmul.f32 0.2, %v692_v53 }
 0x209   : > { %v695_v12 = vmax.f32 %v691_v9, %v693_v10  ;;  %v696_v13 = vmax.f32 %v692_v53, %v694_v11 }
 0x20b   : > { %698 = vst [vmem:[#allocation3 + $0x9] sm:$0xff] %v696_v13  ;;  %697 = vst [vmem:[#allocation3 + $0x1] sm:$0xff] %v695_v12  ;;  %1359 = vmatprep.mubr.f32.mxu1 %v695_v12 }
 0x20c   : > { %1360 = vmatmul.mubr.f32.vlgmr.msra.gmra.mxu1 %v696_v13 }
 0x20d   : > { %1398 = vmatpush3.msra.mxu1 %v1884_v29  ;;  %v897_v29 = vld [vmem:[#allocation9 + $0x110] sm:$0xff] }
 0x20e   : > { %1399 = vmatprep.subr.mxu1 %v909_v14 }
 0x20f   : > { %1400 = vmatpush3.msra.mxu1 %v909_v14 }
 0x210   : > { %1401 = vmatprep.subr.mxu1 %v908_v15 }
 0x211   : > { %1402 = vmatpush3.msra.mxu1 %v908_v15 }
 0x212   : > { %v892_v16 = vld [vmem:[#allocation3 + $0x2] sm:$0xff]  ;;  %1403 = vmatprep.subr.mxu1 %v907_v44  ;;  %v701_v19 = vld [vmem:[#allocation3 + $0xf] sm:$0x1] }
 0x213   : > { %v699_v17 = vld [vmem:[#allocation3 + $0x2] sm:$0x1]  ;;  %1429 = vmatprep.mubr.f32.mxu1 %v892_v16  ;;  %1404 = vmatpush3.msra.mxu1 %v907_v44  ;;  %702 = vst [vmem:[#allocation3 + $0x11] sm:$0x1] %v701_v19  ;;  %v706_v24 = vld [vmem:[#allocation3 + $0x8] sm:$0xff] }
 0x214   : > { %700 = vst [vmem:[#allocation3] sm:$0x1] %v699_v17  ;;  %1405 = vmatprep.subr.mxu1 %v906_v41  ;;  %v703_v19 = vld [vmem:[%s1971_s5] sm:$0x1] }
 0x215   : > { %1406 = vmatpush3.msra.mxu1 %v906_v41 }
 0x216   : > { %1407 = vmatprep.subr.mxu1 %v905_v18 }
 0x217   : > { %1408 = vmatpush3.msra.mxu1 %v905_v18 }
 0x218   : > { %1409 = vmatprep.subr.mxu1 %v904_v20 }
 0x219   : > { %1410 = vmatpush3.msra.mxu1 %v904_v20 }
 0x21a   : > { %1411 = vmatprep.subr.mxu1 %v903_v21  ;;  %v893_v32 = vld [vmem:[#allocation3 + $0xa] sm:$0xff] }
 0x21b   : > { %v705_v23 = vld [vmem:[#allocation3] sm:$0xff]  ;;  %1412 = vmatpush3.msra.mxu1 %v903_v21 }
 0x21c   : > { %1394 = vmatprep.mubr.f32.mxu0 %v705_v23  ;;  %1413 = vmatprep.subr.mxu1 %v902_v22 }
 0x21d   : > { %1395 = vmatmul.mubr.f32.vlgmr.msra.gmra.mxu0 %v706_v24  ;;  %1414 = vmatpush3.msra.mxu1 %v902_v22 }
 0x21e   : > { %1415 = vmatprep.subr.mxu1 %v901_v25 }
 0x21f   : > { %1416 = vmatpush3.msra.mxu1 %v901_v25 }
 0x220   : > { %1417 = vmatprep.subr.mxu1 %v900_v26 }
 0x221   : > { %1418 = vmatpush3.msra.mxu1 %v900_v26 }
 0x222   : > { %1419 = vmatprep.subr.mxu1 %v899_v27 }
 0x223   : > { %1420 = vmatpush3.msra.mxu1 %v899_v27 }
 0x224   : > { %1421 = vmatprep.subr.mxu1 %v898_v28 }
 0x225   : > { %1422 = vmatpush3.msra.mxu1 %v898_v28 }
 0x226   : > { %1423 = vmatprep.subr.mxu1 %v897_v29 }
 0x227   : > { %1424 = vmatpush3.msra.mxu1 %v897_v29 }
 0x228   : > { %1425 = vmatprep.subr.mxu1 %v896_v30 }
 0x229   : > { %1426 = vmatpush3.msra.mxu1 %v896_v30 }
 0x22a   : > { %1427 = vmatprep.subr.mxu1 %v895_v31 }
 0x22b   : > { %1428 = vmatpush3.msra.mxu1 %v895_v31 }
 0x22c   : > { %1430 = vmatmul.mubr.f32.vlgmr.msra.gmra.mxu1 %v893_v32 }
 0x2cc   : > { %v1361_v33 = vpop.f32.mrf.mxu1 }
 0x2ce   : > { %v808_v35 = vpop.f32.mrf.mxu1 }
 0x2dd   : > { %v1396_v34 = vpop.f32.mrf.mxu0 }
 0x2de   : > { %v889_v37 = vadd.f32 %v1396_v34, %v1361_v33 }
 0x2df   : > { %v883_v36 = vpop.f32.mrf.mxu0 }
 0x2e0   : > { %v884_v39 = vadd.f32 %v883_v36, %v808_v35 }
 0x2ec   : > { %v1431_v38 = vpop.f32.mrf.mxu1 }
 0x2ed   : > { %v987_v40 = vadd.f32 %v1431_v38, %v889_v37 }
 0x2ee   : > { %v977_v42 = vpop.f32.mrf.mxu1 }
 0x2ef   : > { %v986_v43 = vadd.f32 %v977_v42, %v884_v39  ;;  %v996_v45 = vmul.f32 %v987_v40, %v987_v40 }
 0x2f1   : > { %v988_v46 = vadd.f32 %v987_v40, %v986_v43  ;;  %v995_v47 = vmul.f32 %v986_v43, %v986_v43 }
 0x2f3   : > { %v989_v48 = vrot.slane %v988_v46, 4  ;;  %v997_v49 = vadd.f32 %v996_v45, %v995_v47 }
 0x2f5   : > { %v998_v50 = vrot.slane %v997_v49, 4  ;;  %v990_v51 = vadd.f32 %v989_v48, %v988_v46 }
 0x2f7   : > { %v991_v52 = vrot.slane %v990_v51, 2  ;;  %v999_v54 = vadd.f32 %v998_v50, %v997_v49 }
 0x2f9   : > { %v992_v55 = vadd.f32 %v991_v52, %v990_v51  ;;  %v1000_v56 = vrot.slane %v999_v54, 2 }
 0x2fb   : > { %v993_v57 = vrot.slane %v992_v55, 1  ;;  %v1001_v58 = vadd.f32 %v1000_v56, %v999_v54 }
 0x2fd   : > { %v994_v59 = vadd.f32 %v993_v57, %v992_v55  ;;  %v1002_v60 = vrot.slane %v1001_v58, 1 }
 0x2ff   : > { %v1004_v63 = vmul.f32 %v1880_v62, %v994_v59  ;;  %v1003_v0 = vadd.f32 %v1002_v60, %v1001_v58 }
 0x301   : > { %1005 = vadd.xlane.f32.xlu1 %v1004_v63  ;;  %v1008_v1 = vmul.f32 %v1880_v62, %v1003_v0 }
 0x305   : > { %1009 = vadd.xlane.f32.xlu1 %v1008_v1 }
 0x38a   : > { %v1006_v2 = vpop.xlane.xlu1 %1005 }
 0x38b   : > { %v1007_v3 = vmul.f32 0.00390625, %v1006_v2 }
 0x38d   : > { %v1012_v5 = vmul.f32 %v1007_v3, %v1007_v3  ;;  %v1016_v9 = vmul.f32 %v1880_v62, %v1007_v3 }
 0x38e   : > { %v1010_v4 = vpop.xlane.xlu1 %1009 }
 0x38f   : > { %v1011_v6 = vmul.f32 0.00390625, %v1010_v4  ;;  %v1017_v53 = vrot.slane %v1016_v9, 4 }
 0x391   : > { %v1013_v7 = vsub.f32 %v1011_v6, %v1012_v5  ;;  %v1018_v10 = vadd.f32 %v1017_v53, %v1016_v9 }
 0x393   : > { %v1014_v8 = vadd.f32 1e-05, %v1013_v7  ;;  %v1019_v13 = vrot.slane %v1018_v10, 2 }
 0x395   : > { %1506 = vrsqrt.f32 %v1014_v8  ;;  %v1020_v44 = vadd.f32 %v1019_v13, %v1018_v10 }
 0x397   : > { %v1021_v17 = vrot.slane %v1020_v44, 1 }
 0x399   : > { %v1022_v21 = vadd.f32 %v1021_v17, %v1020_v44 }
 0x3a2   : > { %v1507_v11 = vpop.eup %1506 }
 0x3a3   : > { %v1023_v12 = vmul.f32 %v1507_v11, %v1880_v62  ;;  %v704_v62 = vld [vmem:[%s1972_s6] sm:$0x1] }
 0x3a5   : > { %v1024_v14 = vrot.slane %v1023_v12, 4 }
 0x3a7   : > { %v1025_v15 = vadd.f32 %v1024_v14, %v1023_v12 }
 0x3a9   : > { %v1026_v41 = vrot.slane %v1025_v15, 2 }
 0x3ab   : > { %v1027_v16 = vadd.f32 %v1026_v41, %v1025_v15 }
 0x3ad   : > { %v1028_v18 = vrot.slane %v1027_v16, 1 }
 0x3af   : > { %v1029_v20 = vadd.f32 %v1028_v18, %v1027_v16 }
 0x3b1   : > { %v1030_v22 = vmul.f32 %v1029_v20, %v703_v19 }
 0x3b3   : > { %v1031_v23 = vmul.f32 %v1030_v22, %v1022_v21  ;;  %v1036_v24 = vrot.slane %v1030_v22, %v1893_v61 }
 0x3b5   : > { %v1032_v25 = vsub.f32 %v704_v62, %v1031_v23  ;;  %v1037_v26 = vmul.f32 %v1036_v24, %v986_v43  ;;  %v1038_v27 = vmul.f32 %v1036_v24, %v987_v40 }
 0x3b7   : > { %v1043_v28 = vrot.slane %v1032_v25, %v1893_v61 }
 0x3b9   : > { %v1045_v29 = vadd.f32 %v1043_v28, %v1037_v26  ;;  %v1046_v30 = vadd.f32 %v1043_v28, %v1038_v27 }
 0x3bb   : > { %v1047_v31 = vmul.f32 0.2, %v1045_v29  ;;  %v1048_v32 = vmul.f32 0.2, %v1046_v30 }
 0x3bd   : > { %v1049_v61 = vmax.f32 %v1045_v29, %v1047_v31  ;;  %v1050_v33 = vmax.f32 %v1046_v30, %v1048_v32 }
 0x3bf   : > { %1051 = vst [vmem:[%s325_s16] sm:$0xff] %v1049_v61  ;;  %1052 = vst [vmem:[%s325_s16 + $0x8] sm:$0xff] %v1050_v33 }
 0x3c0   : > { %1601 = shalt.err (!%p1598_p3)
}
 0x3c1   : > { %s1602_s29 = scalar_lea.hbm %s1921_s30, 256  ;;  %s1606_s13 = scalar_lea.hbm %s1973_s7, 512 }
 0x3c2   : > { %p1603_p11 = scmp.ne.s32.totalorder %s1921_s30, %s1602_s29  ;;  %p1607_p4 = scmp.lt.s32.totalorder %s1921_s30, %s1973_s7 }
 0x3c3   : > { %p1608_p6 = scmp.lt.s32.totalorder %s1606_s13, %s1602_s29 }
 0x3c4   : > { %p1604_p9 = pnand %p1603_p11, %p1994_p2 }
 0x3c5   : > { %p1609_p8 = por %p1608_p6, %p1607_p4 }
 0x3c6   : > { %p1605_p1 = pneg %p1604_p9 }
 0x3c8   : > { %p1610_p5 = pnand %p1609_p8, %p1605_p1 }
 0x3ca   : > { %1613 = shalt.err (!%p1610_p5)
}
 0x3cb   : > { %s1665_s15 = smov 128   ;;  %s1666_s10 = smov 8  }
 0x3cc   : > { %1442 = dma.vmem_to_hbm [thread:$0]  (%p1994_p2), %s1923_s18, 256, %s1921_s30, %s1054_s28, %s1665_s15, %s1665_s15, %s1666_s10  }
 0x3cd PF: > { %s1082_s9 = sand.u32 1, %s1644_s24   ;;  %p1995_p7 = scmp.ne.s32.totalorder %s1982_s8, 0 }
 0x3ce   : > { %p1996_p12 = scmp.ge.s32.totalorder %s1656_s27, 2  ;;  %s1083_s1 = scalar_lea.sflag [#allocation6], %s1082_s9 }
 0x3d0   : > { %p1456_p13 = pnand %p1996_p12, %p1995_p7 }
 0x3d2   : > { %p1457_p0 = pneg %p1456_p13 }
 0x3d4   : > { %1639 = dma.done.wait (%p1457_p0), %s1083_s1, 256  }
 0x3d5   : > { %1641 = vsyncadd (%p1457_p0), %s1083_s1, 4294967040  ;;  %p21_p10 = scmp.ge.s32.totalorder %s1785_s23, 4   ;;  %s1997_s24 = smov %s1648_s25 }
 0x3d6   : > { %s1998_s25 = smov %s1652_s26  ;;  %s1999_s26 = smov %s1801_s12 }
 0x3d7   : > { %s2000_s27 = smov %s1785_s23  ;;  %23 = sbr.rel (!%p21_p10) target bundleno = 8 (0x8), region = 105 }
 0x3dc   :  { %1088 = vsyncpa [#allocation5], 1 }
 0x3dd   :  { %1090 = vsyncpa [#allocation5 + $0x1], 1 }
 0x3de   :  { %1091 = vsyncpa [#allocation8], 1 }
 0x3df   :  { %1092 = vsyncpa [#allocation6], 1 }
 0x3e0   :  { %1094 = vsyncpa [#allocation6 + $0x1], 1 }

</bundles_post_ra>
